<compile_context>
chip_gen: v7x
topology: tpu7x:2x2x1
jax: 0.10.0
libtpu: 0.0.40
codegen_flags: <defaults>
</compile_context>

<pallas_src>
import functools

import jax
import jax.numpy as jnp
from jax.experimental import pallas as pl
from jax.experimental.pallas import tpu as pltpu


# --------------------------------------------------------------------------- #
# Kernels
# --------------------------------------------------------------------------- #
def _plif_step_kernel(w_ref, dv_ref, v_ref, spike_ref, v_out_ref, *,
                      v_threshold, v_reset):
    """Single PLIF timestep on one (tile_rows, LANES) tile."""
    w = w_ref[0]                       # scalar-prefetched learnable 1/tau (SMEM)
    v = v_ref[...]
    dv = dv_ref[...]

    v_new = v + (dv - (v - v_reset)) * w          # membrane charge (clamp=False)
    spike = v_new >= v_threshold                  # heaviside at threshold
    spike_ref[...] = spike.astype(spike_ref.dtype)
    v_out_ref[...] = jnp.where(spike, jnp.full_like(v_new, v_reset), v_new)


def _plif_seq_kernel(w_ref, dv_ref, v0_ref, spike_ref, v_out_ref, *,
                     v_threshold, v_reset):
    """T fused PLIF timesteps; membrane state stays resident in the v_out
    output block across the (inner, "arbitrary") time axis of the grid."""
    t = pl.program_id(1)

    @pl.when(t == 0)
    def _():                                       # load initial state once
        v_out_ref[...] = v0_ref[...]

    w = w_ref[0]
    v = v_out_ref[...]                             # resident VMEM state
    dv = dv_ref[...]

    v_new = v + (dv - (v - v_reset)) * w
    spike = v_new >= v_threshold
    spike_ref[...] = spike.astype(spike_ref.dtype)
    v_out_ref[...] = jnp.where(spike, jnp.full_like(v_new, v_reset), v_new)


# --------------------------------------------------------------------------- #
# Layout planning (lane-dense 2-D slab, tight padding, v7x-friendly tiling)
# --------------------------------------------------------------------------- #
def _round_up(x, m):
    return (x + m - 1) // m * m


def _row_align(spike_dtype):
    # sublane-packing alignment of the narrowest array: f32 -> 8, bf16 -> 16,
    # int8/bool -> 32.
    return 8 * max(1, 4 // jnp.dtype(spike_dtype).itemsize)


def _plan_layout(total, block_rows, row_align):
    lanes = 512 if total >= 512 * 8 else 128
    rows = pl.cdiv(total, lanes)
    rows_a = _round_up(rows, row_align)                 # pad rows only to align
    cap = _round_up(max(block_rows, row_align), row_align)

    if rows_a <= cap:
        tile_rows = rows_a
    else:
        # largest aligned divisor of rows_a that fits the cap -> zero over-pad
        tile_rows = row_align
        for cand in range(cap, row_align - 1, -row_align):
            if rows_a % cand == 0:
                tile_rows = cand
                break
        if tile_rows < min(64, cap):
            tile_rows = cap                             # accept < 1 tile over-pad

    rows_pad = _round_up(rows_a, tile_rows)

    # v7x megacore: prefer >= 2 row tiles so ("parallel",...) uses both TCs.
    if rows_pad // tile_rows < 2 and tile_rows % (2 * row_align) == 0:
        tile_rows //= 2
    return lanes, rows_pad, tile_rows


def _pack_2d(flat, rows_pad, lanes):
    total = flat.shape[-1]
    n_pad = rows_pad * lanes - total
    if n_pad:
        pad_width = [(0, 0)] * (flat.ndim - 1) + [(0, n_pad)]
        flat = jnp.pad(flat, pad_width)
    return flat.reshape(flat.shape[:-1] + (rows_pad, lanes)), n_pad


# --------------------------------------------------------------------------- #
# Wrappers
# --------------------------------------------------------------------------- #
@functools.partial(
    jax.jit,
    static_argnames=("v_threshold", "v_reset", "spike_dtype", "block_rows"))
def plif_forward(dv, v, w, *, v_threshold=1.0, v_reset=0.0,
                 spike_dtype=jnp.bfloat16, block_rows=1024):
    """One PLIFNode forward step.

    dv: (B, C, H, W) float32 voltage increment.
    v : (B, C, H, W) float32 membrane state.
    w : (1,) float32 learnable 1/tau (shared by the layer).
    Returns (spike [spike_dtype, exact 0/1], v_after [float32])."""
    orig_shape = dv.shape
    out_dtype = dv.dtype
    spike_dtype = jnp.dtype(spike_dtype)
    total = dv.size

    lanes, rows_pad, tile_rows = _plan_layout(total, block_rows,
                                              _row_align(spike_dtype))
    dv2, n_pad = _pack_2d(dv.reshape(-1), rows_pad, lanes)
    v2, _ = _pack_2d(v.reshape(-1), rows_pad, lanes)

    grid = (rows_pad // tile_rows,)
    tile_spec = pl.BlockSpec((tile_rows, lanes), lambda i, w_ref: (i, 0))

    kernel = functools.partial(_plif_step_kernel,
                               v_threshold=float(v_threshold),
                               v_reset=float(v_reset))
    n_elems = rows_pad * lanes
    cost = pl.CostEstimate(
        flops=5 * n_elems, transcendentals=0,
        bytes_accessed=n_elems * (12 + spike_dtype.itemsize))

    spike2, v_out2 = pl.pallas_call(
        kernel,
        out_shape=(jax.ShapeDtypeStruct((rows_pad, lanes), spike_dtype),
                   jax.ShapeDtypeStruct((rows_pad, lanes), out_dtype)),
        grid_spec=pltpu.PrefetchScalarGridSpec(
            num_scalar_prefetch=1,            # w -> SMEM once, before the grid
            grid=grid,
            in_specs=[tile_spec, tile_spec],  # dv, v
            out_specs=(tile_spec, tile_spec)),
        compiler_params=pltpu.CompilerParams(
            dimension_semantics=("parallel",),
            vmem_limit_bytes=32 * 1024 * 1024),
        cost_estimate=cost,
    )(w, dv2, v2)

    spike = spike2.reshape(-1)
    v_after = v_out2.reshape(-1)
    if n_pad:
        spike = spike[:total]
        v_after = v_after[:total]
    return spike.reshape(orig_shape), v_after.reshape(orig_shape)


@functools.partial(
    jax.jit,
    static_argnames=("v_threshold", "v_reset", "spike_dtype", "block_rows"))
def plif_forward_seq(dv_seq, v0, w, *, v_threshold=1.0, v_reset=0.0,
                     spike_dtype=jnp.bfloat16, block_rows=1024):
    """T fused PLIFNode steps; membrane state stays in VMEM across timesteps.

    dv_seq: (T, B, C, H, W) float32.   v0: (B, C, H, W) float32.
    Returns (spike_seq [T, B, C, H, W], v_final [B, C, H, W])."""
    T = dv_seq.shape[0]
    state_shape = dv_seq.shape[1:]
    out_dtype = dv_seq.dtype
    spike_dtype = jnp.dtype(spike_dtype)
    total = v0.size

    lanes, rows_pad, tile_rows = _plan_layout(total, block_rows,
                                              _row_align(spike_dtype))
    dv3, n_pad = _pack_2d(dv_seq.reshape(T, total), rows_pad, lanes)  # pad once for all T
    v2, _ = _pack_2d(v0.reshape(-1), rows_pad, lanes)

    n_row_tiles = rows_pad // tile_rows
    grid = (n_row_tiles, T)   # rows outer ("parallel"), time inner ("arbitrary")

    dv_spec = pl.BlockSpec((None, tile_rows, lanes), lambda r, t, w_ref: (t, r, 0))
    st_spec = pl.BlockSpec((tile_rows, lanes), lambda r, t, w_ref: (r, 0))

    kernel = functools.partial(_plif_seq_kernel,
                               v_threshold=float(v_threshold),
                               v_reset=float(v_reset))
    n_elems = rows_pad * lanes
    cost = pl.CostEstimate(
        flops=5 * T * n_elems, transcendentals=0,
        bytes_accessed=T * n_elems * (4 + spike_dtype.itemsize) + 8 * n_elems)

    spike3, v_out2 = pl.pallas_call(
        kernel,
        out_shape=(jax.ShapeDtypeStruct((T, rows_pad, lanes), spike_dtype),
                   jax.ShapeDtypeStruct((rows_pad, lanes), out_dtype)),
        grid_spec=pltpu.PrefetchScalarGridSpec(
            num_scalar_prefetch=1,
            grid=grid,
            in_specs=[dv_spec, st_spec],        # dv_seq, v0
            out_specs=(dv_spec, st_spec)),      # spike_seq, v_final (resident)
        compiler_params=pltpu.CompilerParams(
            dimension_semantics=("parallel", "arbitrary"),
            vmem_limit_bytes=32 * 1024 * 1024),
        cost_estimate=cost,
    )(w, dv3, v2)

    spike_seq = spike3.reshape(T, -1)
    v_final = v_out2.reshape(-1)
    if n_pad:
        spike_seq = spike_seq[:, :total]
        v_final = v_final[:total]
    return spike_seq.reshape((T,) + state_shape), v_final.reshape(state_shape)
    # TODO(synk): the remaining fusion lever is merging this with the conv /
    # linear layer producing dv (dv never touches HBM); out of scope here.


# --------------------------------------------------------------------------- #
# Pure-JAX references
# --------------------------------------------------------------------------- #
def _reference_step(dv, v, w, v_threshold, v_reset):
    v_new = v + (dv - (v - v_reset)) * w[0]
    spike = (v_new >= v_threshold).astype(jnp.float32)
    v_after = jnp.where(spike > 0, jnp.full_like(v_new, v_reset), v_new)
    return spike, v_after


def _reference_seq(dv_seq, v0, w, v_threshold, v_reset):
    spikes, v = [], v0
    for t in range(dv_seq.shape[0]):
        s, v = _reference_step(dv_seq[t], v, w, v_threshold, v_reset)
        spikes.append(s)
    return jnp.stack(spikes), v


def _quantize(x):
    # Snap test inputs to multiples of 1/64 so every intermediate (with
    # w = 0.5, v_reset = 0) is exactly representable in f32 -> bit-exact
    # agreement between kernel and reference regardless of op fusion.
    return jnp.round(x * 64.0) / 64.0


# --------------------------------------------------------------------------- #
# Self-test
# --------------------------------------------------------------------------- #
if __name__ == "__main__":
    # PLIFNode.__init__(init_tau=2.0): self.w = 1 / tensor([init_tau]) -> [0.5]
    init_tau = 2.0
    v_threshold = 1.0
    v_reset = 0.0
    w = jnp.array([1.0 / init_tau], dtype=jnp.float32)

    key = jax.random.PRNGKey(0)
    k0, k1, k2, k3, k4, k5, k6, k7 = jax.random.split(key, 8)

    # --- 1) primary single-step: batch=2, channels=4, 16x16 (lane-aligned) ---
    B, C, H, W = 2, 4, 16, 16
    dv = _quantize(jax.random.normal(k0, (B, C, H, W), jnp.float32) * 2.0)
    v0 = jnp.full((B, C, H, W), v_reset, jnp.float32)
    s_ref, v_ref = _reference_step(dv, v0, w, v_threshold, v_reset)
    s, v_a = plif_forward(dv, v0, w, v_threshold=v_threshold, v_reset=v_reset)
    jax.block_until_ready((s, v_a))
    assert s.shape == dv.shape and v_a.shape == dv.shape
    assert jnp.array_equal(s.astype(jnp.float32), s_ref), "spike mismatch"
    assert jnp.allclose(v_a, v_ref, atol=1e-6), "voltage mismatch"

    # --- 2) multi-tile grid (small block_rows forces several grid steps) -----
    dv_m = _quantize(jax.random.normal(k1, (2, 8, 32, 32), jnp.float32) * 2.0)
    v_m = _quantize(jax.random.normal(k2, (2, 8, 32, 32), jnp.float32))
    s_ref_m, v_ref_m = _reference_step(dv_m, v_m, w, v_threshold, v_reset)
    s_m, v_am = plif_forward(dv_m, v_m, w, v_threshold=v_threshold,
                             v_reset=v_reset, block_rows=16)
    jax.block_until_ready((s_m, v_am))
    assert jnp.array_equal(s_m.astype(jnp.float32), s_ref_m), "tiled spike mismatch"
    assert jnp.allclose(v_am, v_ref_m, atol=1e-6), "tiled voltage mismatch"

    # --- 3) ragged spatial size (14x14 -> non-128-aligned, exercises padding) -
    dv_r = _quantize(jax.random.normal(k3, (3, 5, 14, 14), jnp.float32) * 2.0)
    v_r = _quantize(jax.random.normal(k4, (3, 5, 14, 14), jnp.float32))
    s_ref_r, v_ref_r = _reference_step(dv_r, v_r, w, v_threshold, v_reset)
    s_r, v_ar = plif_forward(dv_r, v_r, w, v_threshold=v_threshold, v_reset=v_reset)
    jax.block_until_ready((s_r, v_ar))
    assert jnp.array_equal(s_r.astype(jnp.float32), s_ref_r), "ragged spike mismatch"
    assert jnp.allclose(v_ar, v_ref_r, atol=1e-6), "ragged voltage mismatch"

    # --- 4) fused multi-timestep (T=8): v stays resident in VMEM -------------
    T = 8
    dv_seq = _quantize(jax.random.normal(k5, (T, B, C, H, W), jnp.float32) * 2.0)
    v_init = jnp.full((B, C, H, W), v_reset, jnp.float32)
    s_seq_ref, v_seq_ref = _reference_seq(dv_seq, v_init, w, v_threshold, v_reset)
    s_seq, v_fin = plif_forward_seq(dv_seq, v_init, w,
                                    v_threshold=v_threshold, v_reset=v_reset)
    jax.block_until_ready((s_seq, v_fin))
    assert s_seq.shape == dv_seq.shape and v_fin.shape == v_init.shape
    assert jnp.array_equal(s_seq.astype(jnp.float32), s_seq_ref), "seq spike mismatch"
    assert jnp.allclose(v_fin, v_seq_ref, atol=1e-6), "seq voltage mismatch"

    # --- 5) fused sequence with ragged spatial shape --------------------------
    T2 = 5
    dv_seq_r = _quantize(jax.random.normal(k6, (T2, 3, 5, 14, 14), jnp.float32) * 2.0)
    v_init_r = _quantize(jax.random.normal(k7, (3, 5, 14, 14), jnp.float32))
    s_ref2, v_ref2 = _reference_seq(dv_seq_r, v_init_r, w, v_threshold, v_reset)
    s2, vf2 = plif_forward_seq(dv_seq_r, v_init_r, w,
                               v_threshold=v_threshold, v_reset=v_reset)
    jax.block_until_ready((s2, vf2))
    assert jnp.array_equal(s2.astype(jnp.float32), s_ref2), "ragged seq spike mismatch"
    assert jnp.allclose(vf2, v_ref2, atol=1e-6), "ragged seq voltage mismatch"

    print("KERNEL_OK")
</pallas_src>

<mosaic_0001>
module attributes {stable_mosaic.version = 11 : i64} {
  func.func @_plif_step_kernel(%arg0: i32, %arg1: memref<1xf32, #tpu.memory_space<smem>>, %arg2: memref<16x128xf32, #tpu.memory_space<vmem>>, %arg3: memref<16x128xf32, #tpu.memory_space<vmem>>, %arg4: memref<16x128xbf16, #tpu.memory_space<vmem>>, %arg5: memref<16x128xf32, #tpu.memory_space<vmem>>) attributes {dimension_semantics = [#tpu.dimension_semantics<parallel>], iteration_bounds = array<i64: 1>, scalar_prefetch = 1 : i64, scratch_operands = 0 : i64, tpu.core_type = #tpu.core_type<tc>, window_params = [{transform_indices = @transform_0, window_bounds = array<i64: 16, 128>}, {transform_indices = @transform_1, window_bounds = array<i64: 16, 128>}, {transform_indices = @transform_2, window_bounds = array<i64: 16, 128>}, {transform_indices = @transform_3, window_bounds = array<i64: 16, 128>}]} {
    %c0 = arith.constant 0 : index
    %0 = memref.load %arg1[%c0] : memref<1xf32, #tpu.memory_space<smem>>
    %c0_0 = arith.constant 0 : index
    %c0_1 = arith.constant 0 : index
    %1 = vector.load %arg3[%c0_0, %c0_1] : memref<16x128xf32, #tpu.memory_space<vmem>>, vector<16x128xf32>
    %c0_2 = arith.constant 0 : index
    %c0_3 = arith.constant 0 : index
    %2 = vector.load %arg2[%c0_2, %c0_3] : memref<16x128xf32, #tpu.memory_space<vmem>>, vector<16x128xf32>
    %cst = arith.constant 0.000000e+00 : f32
    %3 = vector.broadcast %cst : f32 to vector<16x128xf32>
    %4 = arith.subf %1, %3 : vector<16x128xf32>
    %5 = arith.subf %2, %4 : vector<16x128xf32>
    %6 = vector.broadcast %0 : f32 to vector<16x128xf32>
    %7 = arith.mulf %5, %6 : vector<16x128xf32>
    %8 = arith.addf %1, %7 : vector<16x128xf32>
    %cst_4 = arith.constant 1.000000e+00 : f32
    %9 = vector.broadcast %cst_4 : f32 to vector<16x128xf32>
    %10 = arith.cmpf oge, %8, %9 : vector<16x128xf32>
    %11 = arith.extui %10 : vector<16x128xi1> to vector<16x128xi32>
    %12 = arith.sitofp %11 : vector<16x128xi32> to vector<16x128xf32>
    %13 = arith.truncf %12 : vector<16x128xf32> to vector<16x128xbf16>
    %c0_5 = arith.constant 0 : index
    %c0_6 = arith.constant 0 : index
    %14 = vector.load %arg4[%c0_5, %c0_6] : memref<16x128xbf16, #tpu.memory_space<vmem>>, vector<16x128xbf16>
    tpu.vector_store %arg4[%c0_5, %c0_6], %13 {strides = array<i32>} : memref<16x128xbf16, #tpu.memory_space<vmem>>, vector<16x128xbf16>,
    %cst_7 = arith.constant 0.000000e+00 : f32
    %15 = vector.broadcast %cst_7 : f32 to vector<16x128xf32>
    %16 = arith.select %10, %15, %8 : vector<16x128xi1>, vector<16x128xf32>
    %c0_8 = arith.constant 0 : index
    %c0_9 = arith.constant 0 : index
    %17 = vector.load %arg5[%c0_8, %c0_9] : memref<16x128xf32, #tpu.memory_space<vmem>>, vector<16x128xf32>
    tpu.vector_store %arg5[%c0_8, %c0_9], %16 {strides = array<i32>} : memref<16x128xf32, #tpu.memory_space<vmem>>, vector<16x128xf32>,
    return
  }
  func.func @transform_0(%arg0: i32, %arg1: memref<1xf32, #tpu.memory_space<smem>>) -> (i32, i32) {
    %c0_i32 = arith.constant 0 : i32
    %c0_i32_0 = arith.constant 0 : i32
    return %arg0, %c0_i32 : i32, i32
  }
  func.func @transform_1(%arg0: i32, %arg1: memref<1xf32, #tpu.memory_space<smem>>) -> (i32, i32) {
    %c0_i32 = arith.constant 0 : i32
    %c0_i32_0 = arith.constant 0 : i32
    return %arg0, %c0_i32 : i32, i32
  }
  func.func @transform_2(%arg0: i32, %arg1: memref<1xf32, #tpu.memory_space<smem>>) -> (i32, i32) {
    %c0_i32 = arith.constant 0 : i32
    %c0_i32_0 = arith.constant 0 : i32
    return %arg0, %c0_i32 : i32, i32
  }
  func.func @transform_3(%arg0: i32, %arg1: memref<1xf32, #tpu.memory_space<smem>>) -> (i32, i32) {
    %c0_i32 = arith.constant 0 : i32
    %c0_i32_0 = arith.constant 0 : i32
    return %arg0, %c0_i32 : i32, i32
  }
}

</mosaic_0001>

<bundles_post_ra>
// kernel: plif_forward.1
= control target key start
LH: loop header
LB: loop body
LE: loop exit
PB: predicated region body
PF: predicated region fallthrough
CT: control target
= control target key end

     0   :  { %v65_v11 = vmov 0.0   ;;  %s115_s0 = inlined_call_operand.<no memory space> [shape: f32[1], index: 0, kind: input, shape index: {}]   ;;  %s116_s1 = inlined_call_operand.vmem [shape: f32[16,128], index: 1, kind: input, shape index: {}]   ;;  %s117_s2 = inlined_call_operand.vmem [shape: f32[16,128], index: 2, kind: input, shape index: {}]   ;;  %s118_s4 = inlined_call_operand.vmem [shape: f32[16,128], index: 4, kind: output, shape index: {1}]   ;;  %s119_s3 = inlined_call_operand.vmem [shape: bf16[16,128], index: 3, kind: output, shape index: {0}]  }
   0x1   :  { %v16_v0 = vld [vmem:[%s117_s2] sm:$0xff]  ;;  %v17_v1 = vld [vmem:[%s117_s2 + $0x8] sm:$0xff]  ;;  %v22_v3 = vstv %s115_s0 }
   0x2   :  { %v18_v2 = vld [vmem:[%s116_s1] sm:$0xff]  ;;  %v19_v4 = vld [vmem:[%s116_s1 + $0x8] sm:$0xff] }
   0x3   :  { %v20_v5 = vsub.f32 %v18_v2, %v16_v0  ;;  %v21_v6 = vsub.f32 %v19_v4, %v17_v1 }
   0x5   :  { %v23_v7 = vmul.f32 %v22_v3, %v20_v5  ;;  %v24_v8 = vmul.f32 %v22_v3, %v21_v6 }
   0x7   :  { %v25_v9 = vadd.f32 %v23_v7, %v16_v0  ;;  %v26_v10 = vadd.f32 %v24_v8, %v17_v1 }
   0x9   :  { %vm27_vm0 = vcmp.ge.f32.partialorder %v25_v9, 1.0  ;;  %vm28_vm1 = vcmp.ge.f32.partialorder %v26_v10, 1.0 }
   0xa   :  { %v55_v12 = vsel %vm27_vm0, 1.0, %v65_v11  ;;  %v43_v13 = vsel %vm27_vm0, 0.0, %v25_v9  ;;  %v56_v14 = vsel %vm28_vm1, 1.0, %v65_v11  ;;  %v44_v15 = vsel %vm28_vm1, 0.0, %v26_v10 }
   0xb   :  { %45 = vst [vmem:[%s118_s4] sm:$0xff] %v43_v13  ;;  %v62_v16 = vpack.c.bf16 %v56_v14, %v55_v12  ;;  %46 = vst [vmem:[%s118_s4 + $0x8] sm:$0xff] %v44_v15 }
   0xd   :  { %63 = vst [vmem:[%s119_s3] sm:$0xff] %v62_v16  }

</bundles_post_ra>
